<compile_context>
chip_gen: v7x
topology: tpu7x:2x2x1
jax: 0.10.0
libtpu: 0.0.40
codegen_flags: <defaults>
</compile_context>

<pallas_src>
import math

import jax
import jax.numpy as jnp
from jax.experimental import pallas as pl
from jax.experimental.pallas import tpu as pltpu


_PARALLEL_1D = pltpu.CompilerParams(dimension_semantics=("parallel",))


# ----------------------------- Pallas kernels -------------------------------

def _conv_matmul_kernel(w_ref, x_ref, b_ref, o_ref):
    """o = relu(w @ x + b).  w:[Cout,K], x:[K,tm], b:[Cout,1] -> o:[Cout,tm]."""
    y = jnp.dot(w_ref[...], x_ref[...], preferred_element_type=jnp.float32)
    o_ref[...] = jnp.maximum(y + b_ref[...], 0.0)


def _fc_ln_tanh_kernel(h_ref, w_ref, b_ref, g_ref, beta_ref, o_ref):
    """o = tanh(LayerNorm(w @ h + b)) with features on axis 0 (batch on lanes)."""
    y = jnp.dot(w_ref[...], h_ref[...], preferred_element_type=jnp.float32) + b_ref[...]
    mean = jnp.mean(y, axis=0, keepdims=True)
    var = jnp.mean((y - mean) ** 2, axis=0, keepdims=True)
    y_norm = (y - mean) * jax.lax.rsqrt(var + 1e-5)
    o_ref[...] = jnp.tanh(y_norm * g_ref[...] + beta_ref[...])


def _q_mlp_kernel(oa_ref, w1_ref, b1_ref, w2_ref, b2_ref, w3_ref, b3_ref, o_ref):
    """One Q head per grid step: Linear -> ReLU -> Linear -> ReLU -> Linear."""
    oa = oa_ref[...]
    h1 = jnp.dot(w1_ref[0], oa, preferred_element_type=jnp.float32) + b1_ref[0]
    h1 = jnp.maximum(h1, 0.0)
    h2 = jnp.dot(w2_ref[0], h1, preferred_element_type=jnp.float32) + b2_ref[0]
    h2 = jnp.maximum(h2, 0.0)
    o_ref[0] = jnp.dot(w3_ref[0], h2, preferred_element_type=jnp.float32) + b3_ref[0]


# ------------------------------ kernel wrappers ------------------------------

def conv_matmul_bias_relu(w_mat, patches, b_col):
    """[Cout,K] @ [K,M] + bias, ReLU; tiled over M (lane axis) for pipelining."""
    cout, k = w_mat.shape
    m = patches.shape[1]
    tm = m if m <= 1024 else 1024            # when tiled, 1024 is a multiple of 128
    return pl.pallas_call(
        _conv_matmul_kernel,
        out_shape=jax.ShapeDtypeStruct((cout, m), jnp.float32),
        grid=(pl.cdiv(m, tm),),
        in_specs=[
            pl.BlockSpec((cout, k), lambda i: (0, 0)),
            pl.BlockSpec((k, tm), lambda i: (0, i)),
            pl.BlockSpec((cout, 1), lambda i: (0, 0)),
        ],
        out_specs=pl.BlockSpec((cout, tm), lambda i: (0, i)),
        compiler_params=_PARALLEL_1D,
        cost_estimate=pl.CostEstimate(
            flops=2 * cout * k * m,
            transcendentals=0,
            bytes_accessed=4 * (k * m + cout * k + cout + cout * m)),
    )(w_mat, patches, b_col)


def fc_ln_tanh(h_t, w, b_col, g_col, beta_col):
    """Encoder head on transposed activations: h_t [flat, B] -> [feat, B]."""
    flat, bsz = h_t.shape
    feat = w.shape[0]
    tb = bsz if bsz <= 512 else 512          # tile the batch (lane) axis
    return pl.pallas_call(
        _fc_ln_tanh_kernel,
        out_shape=jax.ShapeDtypeStruct((feat, bsz), jnp.float32),
        grid=(pl.cdiv(bsz, tb),),
        in_specs=[
            pl.BlockSpec((flat, tb), lambda i: (0, i)),
            pl.BlockSpec((feat, flat), lambda i: (0, 0)),
            pl.BlockSpec((feat, 1), lambda i: (0, 0)),
            pl.BlockSpec((feat, 1), lambda i: (0, 0)),
            pl.BlockSpec((feat, 1), lambda i: (0, 0)),
        ],
        out_specs=pl.BlockSpec((feat, tb), lambda i: (0, i)),
        compiler_params=_PARALLEL_1D,
        cost_estimate=pl.CostEstimate(
            flops=2 * feat * flat * bsz + 10 * feat * bsz,
            transcendentals=(feat + 2) * bsz,
            bytes_accessed=4 * (flat * bsz + feat * flat + 3 * feat + feat * bsz)),
    )(h_t, w, b_col, g_col, beta_col)


def q_heads(oa_t, qp):
    """Both Q heads fused in one call; grid=(2,) over stacked head parameters."""
    in_dim, bsz = oa_t.shape
    hid = qp["w1"].shape[1]
    per_head_flops = 2 * (hid * in_dim + hid * hid + hid) * bsz
    weight_words = 2 * (hid * in_dim + hid * hid + hid + 2 * hid + 1)
    return pl.pallas_call(
        _q_mlp_kernel,
        out_shape=jax.ShapeDtypeStruct((2, 1, bsz), jnp.float32),
        grid=(2,),
        in_specs=[
            pl.BlockSpec((in_dim, bsz), lambda q: (0, 0)),
            pl.BlockSpec((1, hid, in_dim), lambda q: (q, 0, 0)),
            pl.BlockSpec((1, hid, 1), lambda q: (q, 0, 0)),
            pl.BlockSpec((1, hid, hid), lambda q: (q, 0, 0)),
            pl.BlockSpec((1, hid, 1), lambda q: (q, 0, 0)),
            pl.BlockSpec((1, 1, hid), lambda q: (q, 0, 0)),
            pl.BlockSpec((1, 1, 1), lambda q: (q, 0, 0)),
        ],
        out_specs=pl.BlockSpec((1, 1, bsz), lambda q: (q, 0, 0)),
        compiler_params=_PARALLEL_1D,
        cost_estimate=pl.CostEstimate(
            flops=2 * per_head_flops,
            transcendentals=0,
            bytes_accessed=4 * (in_dim * bsz + weight_words + 2 * bsz)),
    )(oa_t, qp["w1"], qp["b1"], qp["w2"], qp["b2"], qp["w3"], qp["b3"])


# ------------------------------- glue (JAX) ----------------------------------

def im2col_cm(x, kh, kw, stride):
    """x: [C, B, H, W] -> patches [KH*KW*C, B*OH*OW], feature order (kh, kw, c)."""
    c, b, h, w = x.shape
    oh = (h - kh) // stride + 1
    ow = (w - kw) // stride + 1
    slices = []
    for i in range(kh):
        for j in range(kw):
            slices.append(x[:, :, i:i + stride * oh:stride, j:j + stride * ow:stride])
    p = jnp.stack(slices, axis=0)                    # [KH*KW, C, B, OH, OW]
    return p.reshape(kh * kw * c, b * oh * ow), oh, ow


def conv2d_relu(x_cm, w_mat, b_col, stride, kh=3, kw=3):
    """Channel-major Conv2d (valid padding) + ReLU: [C,B,H,W] -> [Cout,B,OH,OW]."""
    b = x_cm.shape[1]
    patches, oh, ow = im2col_cm(x_cm, kh, kw, stride)
    y = conv_matmul_bias_relu(w_mat, patches, b_col)  # [Cout, B*OH*OW]
    return y.reshape(-1, b, oh, ow)                   # free reshape (no transpose)


# ------------------------------ parameter init --------------------------------

def orthogonal(key, rows, cols, gain=1.0):
    n = max(rows, cols)
    a = jax.random.normal(key, (n, n), dtype=jnp.float32)
    q, r = jnp.linalg.qr(a)
    q = q * jnp.sign(jnp.diag(r))
    return (gain * q[:rows, :cols]).astype(jnp.float32)


def make_critic_params(key, obs_shape, action_dim, hidden_dim,
                       encoder_feature_dim, num_layers, num_filters):
    c, h, w = obs_shape
    ks = iter(jax.random.split(key, num_layers + 7))
    gain_relu = math.sqrt(2.0)  # nn.init.calculate_gain('relu')

    # Conv weights: zero everywhere except centre tap, which is orthogonal*gain
    convs, convs_raw = [], []
    in_c = c
    for layer in range(num_layers):
        wc = jnp.zeros((num_filters, in_c, 3, 3), jnp.float32)
        wc = wc.at[:, :, 1, 1].set(orthogonal(next(ks), num_filters, in_c, gain_relu))
        bc = jnp.zeros((num_filters,), jnp.float32)
        convs_raw.append((wc, bc))                     # kept only for the ref check
        # matrix form, columns ordered (kh, kw, c_in) to match im2col_cm
        w_mat = wc.transpose(0, 2, 3, 1).reshape(num_filters, in_c * 9)
        if layer == 0:
            w_mat = w_mat / 255.0                      # fold obs/255 into conv1
        convs.append((w_mat, bc.reshape(num_filters, 1)))
        in_c = num_filters

    # conv output spatial size: first conv stride 2, the rest stride 1 (valid)
    oh = (h - 3) // 2 + 1
    ow = (w - 3) // 2 + 1
    for _ in range(num_layers - 1):
        oh, ow = oh - 2, ow - 2
    flat_dim = num_filters * oh * ow

    fc_w = orthogonal(next(ks), encoder_feature_dim, flat_dim)   # PyTorch [out, in]
    fc_b = jnp.zeros((encoder_feature_dim, 1), jnp.float32)
    ln_g = jnp.ones((encoder_feature_dim, 1), jnp.float32)
    ln_b = jnp.zeros((encoder_feature_dim, 1), jnp.float32)

    def q_head():
        in_dim = encoder_feature_dim + action_dim
        return dict(w1=orthogonal(next(ks), hidden_dim, in_dim),
                    b1=jnp.zeros((hidden_dim, 1), jnp.float32),
                    w2=orthogonal(next(ks), hidden_dim, hidden_dim),
                    b2=jnp.zeros((hidden_dim, 1), jnp.float32),
                    w3=orthogonal(next(ks), 1, hidden_dim),
                    b3=jnp.zeros((1, 1), jnp.float32))

    q1p, q2p = q_head(), q_head()
    q = {k: jnp.stack([q1p[k], q2p[k]]) for k in q1p}   # stacked heads, leading axis 2

    return dict(convs=convs, convs_raw=convs_raw,
                fc_w=fc_w, fc_b=fc_b, ln_g=ln_g, ln_b=ln_b, q=q)


# ------------------------------ Critic forward --------------------------------

def critic_forward(params, obs, action):
    # Encoder: (/255 folded into conv1) -> [conv+relu] x L -> flatten -> fc -> LN -> tanh
    x = obs.astype(jnp.float32).transpose(1, 0, 2, 3)            # [C, B, H, W]
    for i, (w_mat, b_col) in enumerate(params["convs"]):
        x = conv2d_relu(x, w_mat, b_col, stride=2 if i == 0 else 1)
    b = x.shape[1]
    # [(c, oh, ow), B] — same feature order as torch .view(B, -1), transposed
    h_t = x.transpose(0, 2, 3, 1).reshape(-1, b)
    feat_t = fc_ln_tanh(h_t, params["fc_w"], params["fc_b"],
                        params["ln_g"], params["ln_b"])          # [feat, B]
    # QFunctions: cat(obs, action) -> fused 2-head MLP
    oa_t = jnp.concatenate([feat_t, action.astype(jnp.float32).T], axis=0)
    q = q_heads(oa_t, params["q"])                               # [2, 1, B]
    return q[0].T, q[1].T, feat_t.T


# -------------------------- pure-JAX reference check ---------------------------

def _reference_forward(params, obs, action):
    hp = jax.lax.Precision.HIGHEST
    x = obs.astype(jnp.float32) / 255.0
    for i, (wc, bc) in enumerate(params["convs_raw"]):
        s = 2 if i == 0 else 1
        x = jax.lax.conv_general_dilated(
            x, wc, (s, s), "VALID",
            dimension_numbers=("NCHW", "OIHW", "NCHW"), precision=hp)
        x = jnp.maximum(x + bc.reshape(1, -1, 1, 1), 0.0)
    h = x.reshape(x.shape[0], -1)
    y = jnp.dot(h, params["fc_w"].T, precision=hp) + params["fc_b"].reshape(1, -1)
    mean = jnp.mean(y, axis=-1, keepdims=True)
    var = jnp.mean((y - mean) ** 2, axis=-1, keepdims=True)
    feat = jnp.tanh((y - mean) * jax.lax.rsqrt(var + 1e-5)
                    * params["ln_g"].reshape(1, -1) + params["ln_b"].reshape(1, -1))
    oa = jnp.concatenate([feat, action.astype(jnp.float32)], axis=1)
    qs = []
    for head in range(2):
        p = {k: v[head] for k, v in params["q"].items()}
        h1 = jnp.maximum(jnp.dot(oa, p["w1"].T, precision=hp) + p["b1"].reshape(1, -1), 0.0)
        h2 = jnp.maximum(jnp.dot(h1, p["w2"].T, precision=hp) + p["b2"].reshape(1, -1), 0.0)
        qs.append(jnp.dot(h2, p["w3"].T, precision=hp) + p["b3"].reshape(1, -1))
    return qs[0], qs[1], feat


# ----------------------------------- main --------------------------------------

if __name__ == "__main__":
    key = jax.random.PRNGKey(0)
    k_obs, k_act, k_par = jax.random.split(key, 3)

    B = 2
    obs_shape = (4, 16, 16)          # (C, H, W)
    action_shape = (4,)
    hidden_dim = 32
    encoder_feature_dim = 32
    num_layers = 2
    num_filters = 8

    obs = jax.random.uniform(k_obs, (B,) + obs_shape, jnp.float32, 0.0, 255.0)
    action = jax.random.normal(k_act, (B, action_shape[0]), jnp.float32)

    params = make_critic_params(k_par, obs_shape, action_shape[0], hidden_dim,
                                encoder_feature_dim, num_layers, num_filters)

    q1, q2, feat = jax.jit(critic_forward)(params, obs, action)
    jax.block_until_ready((q1, q2, feat))

    assert q1.shape == (B, 1)
    assert q2.shape == (B, 1)
    assert feat.shape == (B, encoder_feature_dim)
    assert bool(jnp.all(jnp.isfinite(q1))) and bool(jnp.all(jnp.isfinite(q2)))

    # correctness check against a pure-JAX reference of the same module
    q1_r, q2_r, feat_r = jax.jit(_reference_forward)(params, obs, action)
    jax.block_until_ready((q1_r, q2_r, feat_r))
    assert bool(jnp.allclose(feat, feat_r, rtol=2e-2, atol=2e-2))
    assert bool(jnp.allclose(q1, q1_r, rtol=2e-2, atol=2e-2))
    assert bool(jnp.allclose(q2, q2_r, rtol=2e-2, atol=2e-2))

    print("KERNEL_OK")
</pallas_src>

<mosaic_0001>
module attributes {stable_mosaic.version = 11 : i64} {
  func.func @_conv_matmul_kernel(%arg0: i32, %arg1: memref<8x36xf32, #tpu.memory_space<vmem>>, %arg2: memref<36x98xf32, #tpu.memory_space<vmem>>, %arg3: memref<8x1xf32, #tpu.memory_space<vmem>>, %arg4: memref<8x98xf32, #tpu.memory_space<vmem>>) attributes {dimension_semantics = [#tpu.dimension_semantics<parallel>], iteration_bounds = array<i64: 1>, scalar_prefetch = 0 : i64, scratch_operands = 0 : i64, tpu.core_type = #tpu.core_type<tc>, window_params = [{pipeline_mode = #tpu.pipeline_mode<synchronous>, transform_indices = @transform_0, window_bounds = array<i64: 8, 36>}, {transform_indices = @transform_1, window_bounds = array<i64: 36, 98>}, {pipeline_mode = #tpu.pipeline_mode<synchronous>, transform_indices = @transform_2, window_bounds = array<i64: 8, 1>}, {transform_indices = @transform_3, window_bounds = array<i64: 8, 98>}]} {
    %c0 = arith.constant 0 : index
    %c0_0 = arith.constant 0 : index
    %0 = vector.load %arg1[%c0, %c0_0] : memref<8x36xf32, #tpu.memory_space<vmem>>, vector<8x36xf32>
    %c0_1 = arith.constant 0 : index
    %c0_2 = arith.constant 0 : index
    %1 = vector.load %arg2[%c0_1, %c0_2] : memref<36x98xf32, #tpu.memory_space<vmem>>, vector<36x98xf32>
    %cst = arith.constant dense<0.000000e+00> : vector<8x98xf32>
    %2 = tpu.matmul %0, %1, %cst {dimension_numbers = #tpu.dot_dimension_numbers<[1], [0], [0], [1], [0, 0, 1, 1], [], []>} : vector<8x36xf32>, vector<36x98xf32>, vector<8x98xf32> -> vector<8x98xf32>
    %c0_3 = arith.constant 0 : index
    %c0_4 = arith.constant 0 : index
    %3 = vector.load %arg3[%c0_3, %c0_4] : memref<8x1xf32, #tpu.memory_space<vmem>>, vector<8x1xf32>
    %4 = vector.broadcast %3 : vector<8x1xf32> to vector<8x98xf32>
    %5 = arith.addf %2, %4 : vector<8x98xf32>
    %cst_5 = arith.constant 0.000000e+00 : f32
    %6 = vector.broadcast %cst_5 : f32 to vector<8x98xf32>
    %7 = arith.maximumf %5, %6 : vector<8x98xf32>
    %c0_6 = arith.constant 0 : index
    %c0_7 = arith.constant 0 : index
    %8 = vector.load %arg4[%c0_6, %c0_7] : memref<8x98xf32, #tpu.memory_space<vmem>>, vector<8x98xf32>
    tpu.vector_store %arg4[%c0_6, %c0_7], %7 {strides = array<i32>} : memref<8x98xf32, #tpu.memory_space<vmem>>, vector<8x98xf32>,
    return
  }
  func.func @transform_0(%arg0: i32) -> (i32, i32) {
    %c0_i32 = arith.constant 0 : i32
    %c0_i32_0 = arith.constant 0 : i32
    %c0_i32_1 = arith.constant 0 : i32
    return %c0_i32, %c0_i32_0 : i32, i32
  }
  func.func @transform_1(%arg0: i32) -> (i32, i32) {
    %c0_i32 = arith.constant 0 : i32
    %c0_i32_0 = arith.constant 0 : i32
    return %c0_i32, %arg0 : i32, i32
  }
  func.func @transform_2(%arg0: i32) -> (i32, i32) {
    %c0_i32 = arith.constant 0 : i32
    %c0_i32_0 = arith.constant 0 : i32
    %c0_i32_1 = arith.constant 0 : i32
    return %c0_i32, %c0_i32_0 : i32, i32
  }
  func.func @transform_3(%arg0: i32) -> (i32, i32) {
    %c0_i32 = arith.constant 0 : i32
    %c0_i32_0 = arith.constant 0 : i32
    return %c0_i32, %arg0 : i32, i32
  }
}

module attributes {stable_mosaic.version = 11 : i64} {
  func.func @_conv_matmul_kernel(%arg0: i32, %arg1: memref<8x72xf32, #tpu.memory_space<vmem>>, %arg2: memref<72x50xf32, #tpu.memory_space<vmem>>, %arg3: memref<8x1xf32, #tpu.memory_space<vmem>>, %arg4: memref<8x50xf32, #tpu.memory_space<vmem>>) attributes {dimension_semantics = [#tpu.dimension_semantics<parallel>], iteration_bounds = array<i64: 1>, scalar_prefetch = 0 : i64, scratch_operands = 0 : i64, tpu.core_type = #tpu.core_type<tc>, window_params = [{pipeline_mode = #tpu.pipeline_mode<synchronous>, transform_indices = @transform_0, window_bounds = array<i64: 8, 72>}, {transform_indices = @transform_1, window_bounds = array<i64: 72, 50>}, {pipeline_mode = #tpu.pipeline_mode<synchronous>, transform_indices = @transform_2, window_bounds = array<i64: 8, 1>}, {transform_indices = @transform_3, window_bounds = array<i64: 8, 50>}]} {
    %c0 = arith.constant 0 : index
    %c0_0 = arith.constant 0 : index
    %0 = vector.load %arg1[%c0, %c0_0] : memref<8x72xf32, #tpu.memory_space<vmem>>, vector<8x72xf32>
    %c0_1 = arith.constant 0 : index
    %c0_2 = arith.constant 0 : index
    %1 = vector.load %arg2[%c0_1, %c0_2] : memref<72x50xf32, #tpu.memory_space<vmem>>, vector<72x50xf32>
    %cst = arith.constant dense<0.000000e+00> : vector<8x50xf32>
    %2 = tpu.matmul %0, %1, %cst {dimension_numbers = #tpu.dot_dimension_numbers<[1], [0], [0], [1], [0, 0, 1, 1], [], []>} : vector<8x72xf32>, vector<72x50xf32>, vector<8x50xf32> -> vector<8x50xf32>
    %c0_3 = arith.constant 0 : index
    %c0_4 = arith.constant 0 : index
    %3 = vector.load %arg3[%c0_3, %c0_4] : memref<8x1xf32, #tpu.memory_space<vmem>>, vector<8x1xf32>
    %4 = vector.broadcast %3 : vector<8x1xf32> to vector<8x50xf32>
    %5 = arith.addf %2, %4 : vector<8x50xf32>
    %cst_5 = arith.constant 0.000000e+00 : f32
    %6 = vector.broadcast %cst_5 : f32 to vector<8x50xf32>
    %7 = arith.maximumf %5, %6 : vector<8x50xf32>
    %c0_6 = arith.constant 0 : index
    %c0_7 = arith.constant 0 : index
    %8 = vector.load %arg4[%c0_6, %c0_7] : memref<8x50xf32, #tpu.memory_space<vmem>>, vector<8x50xf32>
    tpu.vector_store %arg4[%c0_6, %c0_7], %7 {strides = array<i32>} : memref<8x50xf32, #tpu.memory_space<vmem>>, vector<8x50xf32>,
    return
  }
  func.func @transform_0(%arg0: i32) -> (i32, i32) {
    %c0_i32 = arith.constant 0 : i32
    %c0_i32_0 = arith.constant 0 : i32
    %c0_i32_1 = arith.constant 0 : i32
    return %c0_i32, %c0_i32_0 : i32, i32
  }
  func.func @transform_1(%arg0: i32) -> (i32, i32) {
    %c0_i32 = arith.constant 0 : i32
    %c0_i32_0 = arith.constant 0 : i32
    return %c0_i32, %arg0 : i32, i32
  }
  func.func @transform_2(%arg0: i32) -> (i32, i32) {
    %c0_i32 = arith.constant 0 : i32
    %c0_i32_0 = arith.constant 0 : i32
    %c0_i32_1 = arith.constant 0 : i32
    return %c0_i32, %c0_i32_0 : i32, i32
  }
  func.func @transform_3(%arg0: i32) -> (i32, i32) {
    %c0_i32 = arith.constant 0 : i32
    %c0_i32_0 = arith.constant 0 : i32
    return %c0_i32, %arg0 : i32, i32
  }
}

module attributes {stable_mosaic.version = 11 : i64} {
  func.func @_fc_ln_tanh_kernel(%arg0: i32, %arg1: memref<200x2xf32, #tpu.memory_space<vmem>>, %arg2: memref<32x200xf32, #tpu.memory_space<vmem>>, %arg3: memref<32x1xf32, #tpu.memory_space<vmem>>, %arg4: memref<32x1xf32, #tpu.memory_space<vmem>>, %arg5: memref<32x1xf32, #tpu.memory_space<vmem>>, %arg6: memref<32x2xf32, #tpu.memory_space<vmem>>) attributes {dimension_semantics = [#tpu.dimension_semantics<parallel>], iteration_bounds = array<i64: 1>, scalar_prefetch = 0 : i64, scratch_operands = 0 : i64, tpu.core_type = #tpu.core_type<tc>, window_params = [{transform_indices = @transform_0, window_bounds = array<i64: 200, 2>}, {pipeline_mode = #tpu.pipeline_mode<synchronous>, transform_indices = @transform_1, window_bounds = array<i64: 32, 200>}, {pipeline_mode = #tpu.pipeline_mode<synchronous>, transform_indices = @transform_2, window_bounds = array<i64: 32, 1>}, {pipeline_mode = #tpu.pipeline_mode<synchronous>, transform_indices = @transform_3, window_bounds = array<i64: 32, 1>}, {pipeline_mode = #tpu.pipeline_mode<synchronous>, transform_indices = @transform_4, window_bounds = array<i64: 32, 1>}, {transform_indices = @transform_5, window_bounds = array<i64: 32, 2>}]} {
    %c0 = arith.constant 0 : index
    %c0_0 = arith.constant 0 : index
    %0 = vector.load %arg2[%c0, %c0_0] : memref<32x200xf32, #tpu.memory_space<vmem>>, vector<32x200xf32>
    %c0_1 = arith.constant 0 : index
    %c0_2 = arith.constant 0 : index
    %1 = vector.load %arg1[%c0_1, %c0_2] : memref<200x2xf32, #tpu.memory_space<vmem>>, vector<200x2xf32>
    %cst = arith.constant dense<0.000000e+00> : vector<32x2xf32>
    %2 = tpu.matmul %0, %1, %cst {dimension_numbers = #tpu.dot_dimension_numbers<[1], [0], [0], [1], [0, 0, 1, 1], [], []>} : vector<32x200xf32>, vector<200x2xf32>, vector<32x2xf32> -> vector<32x2xf32>
    %c0_3 = arith.constant 0 : index
    %c0_4 = arith.constant 0 : index
    %3 = vector.load %arg3[%c0_3, %c0_4] : memref<32x1xf32, #tpu.memory_space<vmem>>, vector<32x1xf32>
    %4 = vector.broadcast %3 : vector<32x1xf32> to vector<32x2xf32>
    %5 = arith.addf %2, %4 : vector<32x2xf32>
    %cst_5 = arith.constant dense<0.000000e+00> : vector<2xf32>
    %6 = vector.multi_reduction <add>, %5, %cst_5 [0] : vector<32x2xf32> to vector<2xf32>
    %7 = vector.shape_cast %6 : vector<2xf32> to vector<1x2xf32>
    %cst_6 = arith.constant 3.200000e+01 : f32
    %8 = vector.broadcast %cst_6 : f32 to vector<1x2xf32>
    %9 = arith.divf %7, %8 : vector<1x2xf32>
    %10 = vector.broadcast %9 : vector<1x2xf32> to vector<32x2xf32>
    %11 = arith.subf %5, %10 : vector<32x2xf32>
    %12 = arith.mulf %11, %11 : vector<32x2xf32>
    %cst_7 = arith.constant dense<0.000000e+00> : vector<2xf32>
    %13 = vector.multi_reduction <add>, %12, %cst_7 [0] : vector<32x2xf32> to vector<2xf32>
    %14 = vector.shape_cast %13 : vector<2xf32> to vector<1x2xf32>
    %cst_8 = arith.constant 3.200000e+01 : f32
    %15 = vector.broadcast %cst_8 : f32 to vector<1x2xf32>
    %16 = arith.divf %14, %15 : vector<1x2xf32>
    %17 = vector.broadcast %9 : vector<1x2xf32> to vector<32x2xf32>
    %18 = arith.subf %5, %17 : vector<32x2xf32>
    %cst_9 = arith.constant 9.99999974E-6 : f32
    %19 = vector.broadcast %cst_9 : f32 to vector<1x2xf32>
    %20 = arith.addf %16, %19 : vector<1x2xf32>
    %21 = math.rsqrt %20 : vector<1x2xf32>
    %22 = vector.broadcast %21 : vector<1x2xf32> to vector<32x2xf32>
    %23 = arith.mulf %18, %22 : vector<32x2xf32>
    %c0_10 = arith.constant 0 : index
    %c0_11 = arith.constant 0 : index
    %24 = vector.load %arg4[%c0_10, %c0_11] : memref<32x1xf32, #tpu.memory_space<vmem>>, vector<32x1xf32>
    %25 = vector.broadcast %24 : vector<32x1xf32> to vector<32x2xf32>
    %26 = arith.mulf %23, %25 : vector<32x2xf32>
    %c0_12 = arith.constant 0 : index
    %c0_13 = arith.constant 0 : index
    %27 = vector.load %arg5[%c0_12, %c0_13] : memref<32x1xf32, #tpu.memory_space<vmem>>, vector<32x1xf32>
    %28 = vector.broadcast %27 : vector<32x1xf32> to vector<32x2xf32>
    %29 = arith.addf %26, %28 : vector<32x2xf32>
    %30 = math.tanh %29 : vector<32x2xf32>
    %c0_14 = arith.constant 0 : index
    %c0_15 = arith.constant 0 : index
    %31 = vector.load %arg6[%c0_14, %c0_15] : memref<32x2xf32, #tpu.memory_space<vmem>>, vector<32x2xf32>
    tpu.vector_store %arg6[%c0_14, %c0_15], %30 {strides = array<i32>} : memref<32x2xf32, #tpu.memory_space<vmem>>, vector<32x2xf32>,
    return
  }
  func.func @transform_0(%arg0: i32) -> (i32, i32) {
    %c0_i32 = arith.constant 0 : i32
    %c0_i32_0 = arith.constant 0 : i32
    return %c0_i32, %arg0 : i32, i32
  }
  func.func @transform_1(%arg0: i32) -> (i32, i32) {
    %c0_i32 = arith.constant 0 : i32
    %c0_i32_0 = arith.constant 0 : i32
    %c0_i32_1 = arith.constant 0 : i32
    return %c0_i32, %c0_i32_0 : i32, i32
  }
  func.func @transform_2(%arg0: i32) -> (i32, i32) {
    %c0_i32 = arith.constant 0 : i32
    %c0_i32_0 = arith.constant 0 : i32
    %c0_i32_1 = arith.constant 0 : i32
    return %c0_i32, %c0_i32_0 : i32, i32
  }
  func.func @transform_3(%arg0: i32) -> (i32, i32) {
    %c0_i32 = arith.constant 0 : i32
    %c0_i32_0 = arith.constant 0 : i32
    %c0_i32_1 = arith.constant 0 : i32
    return %c0_i32, %c0_i32_0 : i32, i32
  }
  func.func @transform_4(%arg0: i32) -> (i32, i32) {
    %c0_i32 = arith.constant 0 : i32
    %c0_i32_0 = arith.constant 0 : i32
    %c0_i32_1 = arith.constant 0 : i32
    return %c0_i32, %c0_i32_0 : i32, i32
  }
  func.func @transform_5(%arg0: i32) -> (i32, i32) {
    %c0_i32 = arith.constant 0 : i32
    %c0_i32_0 = arith.constant 0 : i32
    return %c0_i32, %arg0 : i32, i32
  }
}

module attributes {stable_mosaic.version = 11 : i64} {
  func.func @_q_mlp_kernel(%arg0: i32, %arg1: memref<36x2xf32, #tpu.memory_space<vmem>>, %arg2: memref<1x32x36xf32, #tpu.memory_space<vmem>>, %arg3: memref<1x32x1xf32, #tpu.memory_space<vmem>>, %arg4: memref<1x32x32xf32, #tpu.memory_space<vmem>>, %arg5: memref<1x32x1xf32, #tpu.memory_space<vmem>>, %arg6: memref<1x1x32xf32, #tpu.memory_space<vmem>>, %arg7: memref<1x1x1xf32, #tpu.memory_space<vmem>>, %arg8: memref<1x1x2xf32, #tpu.memory_space<vmem>>) attributes {dimension_semantics = [#tpu.dimension_semantics<parallel>], iteration_bounds = array<i64: 2>, scalar_prefetch = 0 : i64, scratch_operands = 0 : i64, tpu.core_type = #tpu.core_type<tc>, window_params = [{pipeline_mode = #tpu.pipeline_mode<synchronous>, transform_indices = @transform_0, window_bounds = array<i64: 36, 2>}, {transform_indices = @transform_1, window_bounds = array<i64: 1, 32, 36>}, {transform_indices = @transform_2, window_bounds = array<i64: 1, 32, 1>}, {transform_indices = @transform_3, window_bounds = array<i64: 1, 32, 32>}, {transform_indices = @transform_4, window_bounds = array<i64: 1, 32, 1>}, {transform_indices = @transform_5, window_bounds = array<i64: 1, 1, 32>}, {transform_indices = @transform_6, window_bounds = array<i64: 1, 1, 1>}, {transform_indices = @transform_7, window_bounds = array<i64: 1, 1, 2>}]} {
    %c0 = arith.constant 0 : index
    %c0_0 = arith.constant 0 : index
    %0 = vector.load %arg1[%c0, %c0_0] : memref<36x2xf32, #tpu.memory_space<vmem>>, vector<36x2xf32>
    %c0_1 = arith.constant 0 : index
    %c0_2 = arith.constant 0 : index
    %c0_3 = arith.constant 0 : index
    %1 = vector.load %arg2[%c0_1, %c0_2, %c0_3] : memref<1x32x36xf32, #tpu.memory_space<vmem>>, vector<1x32x36xf32>
    %2 = vector.shape_cast %1 : vector<1x32x36xf32> to vector<32x36xf32>
    %cst = arith.constant dense<0.000000e+00> : vector<32x2xf32>
    %3 = tpu.matmul %2, %0, %cst {dimension_numbers = #tpu.dot_dimension_numbers<[1], [0], [0], [1], [0, 0, 1, 1], [], []>} : vector<32x36xf32>, vector<36x2xf32>, vector<32x2xf32> -> vector<32x2xf32>
    %c0_4 = arith.constant 0 : index
    %c0_5 = arith.constant 0 : index
    %c0_6 = arith.constant 0 : index
    %4 = vector.load %arg3[%c0_4, %c0_5, %c0_6] : memref<1x32x1xf32, #tpu.memory_space<vmem>>, vector<1x32x1xf32>
    %5 = vector.shape_cast %4 : vector<1x32x1xf32> to vector<32x1xf32>
    %6 = vector.broadcast %5 : vector<32x1xf32> to vector<32x2xf32>
    %7 = arith.addf %3, %6 : vector<32x2xf32>
    %cst_7 = arith.constant 0.000000e+00 : f32
    %8 = vector.broadcast %cst_7 : f32 to vector<32x2xf32>
    %9 = arith.maximumf %7, %8 : vector<32x2xf32>
    %c0_8 = arith.constant 0 : index
    %c0_9 = arith.constant 0 : index
    %c0_10 = arith.constant 0 : index
    %10 = vector.load %arg4[%c0_8, %c0_9, %c0_10] : memref<1x32x32xf32, #tpu.memory_space<vmem>>, vector<1x32x32xf32>
    %11 = vector.shape_cast %10 : vector<1x32x32xf32> to vector<32x32xf32>
    %cst_11 = arith.constant dense<0.000000e+00> : vector<32x2xf32>
    %12 = tpu.matmul %11, %9, %cst_11 {dimension_numbers = #tpu.dot_dimension_numbers<[1], [0], [0], [1], [0, 0, 1, 1], [], []>} : vector<32x32xf32>, vector<32x2xf32>, vector<32x2xf32> -> vector<32x2xf32>
    %c0_12 = arith.constant 0 : index
    %c0_13 = arith.constant 0 : index
    %c0_14 = arith.constant 0 : index
    %13 = vector.load %arg5[%c0_12, %c0_13, %c0_14] : memref<1x32x1xf32, #tpu.memory_space<vmem>>, vector<1x32x1xf32>
    %14 = vector.shape_cast %13 : vector<1x32x1xf32> to vector<32x1xf32>
    %15 = vector.broadcast %14 : vector<32x1xf32> to vector<32x2xf32>
    %16 = arith.addf %12, %15 : vector<32x2xf32>
    %cst_15 = arith.constant 0.000000e+00 : f32
    %17 = vector.broadcast %cst_15 : f32 to vector<32x2xf32>
    %18 = arith.maximumf %16, %17 : vector<32x2xf32>
    %c0_16 = arith.constant 0 : index
    %c0_17 = arith.constant 0 : index
    %c0_18 = arith.constant 0 : index
    %19 = vector.load %arg6[%c0_16, %c0_17, %c0_18] : memref<1x1x32xf32, #tpu.memory_space<vmem>>, vector<1x1x32xf32>
    %20 = vector.shape_cast %19 : vector<1x1x32xf32> to vector<1x32xf32>
    %cst_19 = arith.constant dense<0.000000e+00> : vector<1x2xf32>
    %21 = tpu.matmul %20, %18, %cst_19 {dimension_numbers = #tpu.dot_dimension_numbers<[1], [0], [0], [1], [0, 0, 1, 1], [], []>} : vector<1x32xf32>, vector<32x2xf32>, vector<1x2xf32> -> vector<1x2xf32>
    %c0_20 = arith.constant 0 : index
    %c0_21 = arith.constant 0 : index
    %c0_22 = arith.constant 0 : index
    %22 = vector.load %arg7[%c0_20, %c0_21, %c0_22] : memref<1x1x1xf32, #tpu.memory_space<vmem>>, vector<1x1x1xf32>
    %23 = vector.shape_cast %22 : vector<1x1x1xf32> to vector<1x1xf32>
    %24 = vector.broadcast %23 : vector<1x1xf32> to vector<1x2xf32>
    %25 = arith.addf %21, %24 : vector<1x2xf32>
    %c0_23 = arith.constant 0 : index
    %c0_24 = arith.constant 0 : index
    %c0_25 = arith.constant 0 : index
    %26 = vector.load %arg8[%c0_23, %c0_24, %c0_25] : memref<1x1x2xf32, #tpu.memory_space<vmem>>, vector<1x1x2xf32>
    %27 = vector.shape_cast %26 : vector<1x1x2xf32> to vector<1x2xf32>
    %28 = vector.shape_cast %25 : vector<1x2xf32> to vector<1x1x2xf32>
    tpu.vector_store %arg8[%c0_23, %c0_24, %c0_25], %28 {strides = array<i32>} : memref<1x1x2xf32, #tpu.memory_space<vmem>>, vector<1x1x2xf32>,
    return
  }
  func.func @transform_0(%arg0: i32) -> (i32, i32) {
    %c0_i32 = arith.constant 0 : i32
    %c0_i32_0 = arith.constant 0 : i32
    %c0_i32_1 = arith.constant 0 : i32
    return %c0_i32, %c0_i32_0 : i32, i32
  }
  func.func @transform_1(%arg0: i32) -> (i32, i32, i32) {
    %c0_i32 = arith.constant 0 : i32
    %c0_i32_0 = arith.constant 0 : i32
    %c0_i32_1 = arith.constant 0 : i32
    return %arg0, %c0_i32, %c0_i32_0 : i32, i32, i32
  }
  func.func @transform_2(%arg0: i32) -> (i32, i32, i32) {
    %c0_i32 = arith.constant 0 : i32
    %c0_i32_0 = arith.constant 0 : i32
    %c0_i32_1 = arith.constant 0 : i32
    return %arg0, %c0_i32, %c0_i32_0 : i32, i32, i32
  }
  func.func @transform_3(%arg0: i32) -> (i32, i32, i32) {
    %c0_i32 = arith.constant 0 : i32
    %c0_i32_0 = arith.constant 0 : i32
    %c0_i32_1 = arith.constant 0 : i32
    return %arg0, %c0_i32, %c0_i32_0 : i32, i32, i32
  }
  func.func @transform_4(%arg0: i32) -> (i32, i32, i32) {
    %c0_i32 = arith.constant 0 : i32
    %c0_i32_0 = arith.constant 0 : i32
    %c0_i32_1 = arith.constant 0 : i32
    return %arg0, %c0_i32, %c0_i32_0 : i32, i32, i32
  }
  func.func @transform_5(%arg0: i32) -> (i32, i32, i32) {
    %c0_i32 = arith.constant 0 : i32
    %c0_i32_0 = arith.constant 0 : i32
    %c0_i32_1 = arith.constant 0 : i32
    return %arg0, %c0_i32, %c0_i32_0 : i32, i32, i32
  }
  func.func @transform_6(%arg0: i32) -> (i32, i32, i32) {
    %c0_i32 = arith.constant 0 : i32
    %c0_i32_0 = arith.constant 0 : i32
    %c0_i32_1 = arith.constant 0 : i32
    return %arg0, %c0_i32, %c0_i32_0 : i32, i32, i32
  }
  func.func @transform_7(%arg0: i32) -> (i32, i32, i32) {
    %c0_i32 = arith.constant 0 : i32
    %c0_i32_0 = arith.constant 0 : i32
    %c0_i32_1 = arith.constant 0 : i32
    return %arg0, %c0_i32, %c0_i32_0 : i32, i32, i32
  }
}

</mosaic_0001>

<bundles_post_ra>
// kernel: critic_forward.4
= control target key start
LH: loop header
LB: loop body
LE: loop exit
PB: predicated region body
PF: predicated region fallthrough
CT: control target
= control target key end

     0   :  { %v143_v0 = vmov 0.0|0.0   ;;  %vm144_vm0 = vmmov 0   ;;  %v145_v4 = vmov 0.0   ;;  %v146_v7 = vmov 0   ;;  %s191_s1 = inlined_call_operand.vmem [shape: f32[36,98], index: 1, kind: input, shape index: {}]   ;;  %s192_s2 = inlined_call_operand.vmem [shape: f32[8,1], index: 2, kind: input, shape index: {}]   ;;  %s193_s0 = inlined_call_operand.vmem [shape: f32[8,36], index: 0, kind: input, shape index: {}]   ;;  %s194_s3 = inlined_call_operand.vmem [shape: f32[8,98], index: 3, kind: output, shape index: {}]  }
   0x1   :  { %132 = vmatprep.subr.bf16.mxu0 %v143_v0  ;;  %v15_v1 = vld [vmem:[%s191_s1] sm:$0xff]  ;;  %v16_v2 = vld [vmem:[%s191_s1 + $0x8] sm:$0xff]  ;;  %v17_v3 = vld [vmem:[%s191_s1 + $0x10] sm:$0xff]  ;;  %129 = vmatprep.mubr.msk.f32.mxu0 %vm144_vm0, %v145_v4  ;;  %vm30_vm1 = vcmask 1043456   ;;  %vm26_vm2 = vcmask 293888   ;;  %vm105_vm3 = vcmask 801792  }
   0x2   :  { %v133_v5 = vpack.c.bf16 %v16_v2, %v15_v1  ;;  %v18_v6 = vld [vmem:[%s191_s1 + $0x18] sm:$0xff]  ;;  %142 = vset.pattern.permute.xlu0 %v146_v7  ;;  %v20_v8 = vld [vmem:[%s192_s2] sm:$0xff] }
   0x3   :  { %v136_v9 = vpack.c.bf16 %v18_v6, %v17_v3  ;;  %23 = vperm.xlu0 %142, %v20_v8   ;;  %v19_v10 = vld [vmem:[%s191_s1 + $0x20] sm:$0xf] }
   0x4   :  { %134 = vmatpush3.bf16.msra.mxu0 %v133_v5  ;;  %v14_v11 = vld [vmem:[%s193_s0] sm:$0xff] }
   0x5   :  { %135 = vmatprep.subr.bf16.mxu0 %v143_v0 }
   0x8   :  { %137 = vmatpush3.bf16.msra.mxu0 %v136_v9 }
   0x9   :  { %127 = vmatprep.subr.mxu0 %v145_v4 }
   0xc   :  { %128 = vmatpush3.msk.msra.mxu0 %vm30_vm1, %v19_v10 }
   0xd   :  { %130 = vmatmul.mubr.msk.f32.vlgmr.msra.gmra.mrb[0].mxu0 %vm26_vm2, %v14_v11 }
  0x82   :  { %v24_v12 = vpop.permute.xlu0 %23 }
  0xe0   :  { %v100_v13 = vpop.f32.mrb[0].mxu0 }
  0xe1   :  { %v101_v14 = vadd.f32 %v100_v13, %v24_v12  ;;  %v131_v15 = vpop.f32.mrb[1].mxu0 }
  0xe3   :  { %v104_v16 = vmax.f32 %v101_v14, 0.0 }
  0xe5   :  { %106 = vst.msk [vmem:[%s194_s3] sm:$0xff] %vm105_vm3, %v104_v16 }

// kernel: critic_forward.5
= control target key start
LH: loop header
LB: loop body
LE: loop exit
PB: predicated region body
PF: predicated region fallthrough
CT: control target
= control target key end

     0   :  { %v160_v0 = vmov 0.0|0.0   ;;  %vm161_vm0 = vmmov 0   ;;  %v162_v4 = vmov 0.0   ;;  %v163_v7 = vmov 0   ;;  %s220_s1 = inlined_call_operand.vmem [shape: f32[72,50], index: 1, kind: input, shape index: {}]   ;;  %s221_s2 = inlined_call_operand.vmem [shape: f32[8,1], index: 2, kind: input, shape index: {}]   ;;  %s222_s0 = inlined_call_operand.vmem [shape: f32[8,72], index: 0, kind: input, shape index: {}]   ;;  %s223_s3 = inlined_call_operand.vmem [shape: f32[8,50], index: 3, kind: output, shape index: {}]  }
   0x1   :  { %143 = vmatprep.subr.bf16.mxu0 %v160_v0  ;;  %v15_v1 = vld [vmem:[%s220_s1] sm:$0xff]  ;;  %v16_v2 = vld [vmem:[%s220_s1 + $0x8] sm:$0xff]  ;;  %v17_v3 = vld [vmem:[%s220_s1 + $0x10] sm:$0xff]  ;;  %140 = vmatprep.mubr.msk.f32.mxu0 %vm161_vm0, %v162_v4  ;;  %vm30_vm1 = vcmask 588800   ;;  %vm105_vm2 = vcmask 408576  }
   0x2   :  { %v144_v5 = vpack.c.bf16 %v16_v2, %v15_v1  ;;  %v18_v6 = vld [vmem:[%s220_s1 + $0x18] sm:$0xff]  ;;  %159 = vset.pattern.permute.xlu0 %v163_v7  ;;  %v24_v9 = vld [vmem:[%s221_s2] sm:$0xff]  ;;  %v20_v11 = vld [vmem:[%s220_s1 + $0x28] sm:$0xff] }
   0x3   :  { %v147_v8 = vpack.c.bf16 %v18_v6, %v17_v3  ;;  %v19_v10 = vld [vmem:[%s220_s1 + $0x20] sm:$0xff]  ;;  %27 = vperm.xlu0 %159, %v24_v9   ;;  %v21_v13 = vld [vmem:[%s220_s1 + $0x30] sm:$0xff]  ;;  %v22_v14 = vld [vmem:[%s220_s1 + $0x38] sm:$0xff] }
   0x4   :  { %145 = vmatpush3.bf16.msra.mxu0 %v144_v5  ;;  %v150_v12 = vpack.c.bf16 %v20_v11, %v19_v10  ;;  %v153_v15 = vpack.c.bf16 %v22_v14, %v21_v13  ;;  %v23_v16 = vld [vmem:[%s220_s1 + $0x40] sm:$0xff] }
   0x5   :  { %146 = vmatprep.subr.bf16.mxu0 %v160_v0  ;;  %v14_v17 = vld [vmem:[%s222_s0] sm:$0xff] }
   0x8   :  { %148 = vmatpush3.bf16.msra.mxu0 %v147_v8 }
   0x9   :  { %149 = vmatprep.subr.bf16.mxu0 %v160_v0 }
   0xc   :  { %151 = vmatpush3.bf16.msra.mxu0 %v150_v12 }
   0xd   :  { %152 = vmatprep.subr.bf16.mxu0 %v160_v0 }
  0x10   :  { %154 = vmatpush3.bf16.msra.mxu0 %v153_v15 }
  0x11   :  { %138 = vmatprep.subr.mxu0 %v162_v4 }
  0x14   :  { %139 = vmatpush3.msra.mxu0 %v23_v16 }
  0x15   :  { %141 = vmatmul.mubr.msk.f32.vlgmr.msra.gmra.mrb[0].mxu0 %vm30_vm1, %v14_v17 }
  0x82   :  { %v28_v18 = vpop.permute.xlu0 %27 }
  0xe8   :  { %v100_v19 = vpop.f32.mrb[0].mxu0 }
  0xe9   :  { %v101_v20 = vadd.f32 %v100_v19, %v28_v18  ;;  %v142_v21 = vpop.f32.mrb[1].mxu0 }
  0xeb   :  { %v104_v22 = vmax.f32 %v101_v20, 0.0 }
  0xed   :  { %106 = vst.msk [vmem:[%s223_s3] sm:$0xff] %vm105_vm2, %v104_v22 }

// kernel: critic_forward.6
= control target key start
LH: loop header
LB: loop body
LE: loop exit
PB: predicated region body
PF: predicated region fallthrough
CT: control target
= control target key end

     0   :  { %v368_v0 = vmov 0.0|0.0   ;;  %v369_v6 = vmov 0   ;;  %vm77_vm0 = vcmask 588800   ;;  %v370_v52 = vmov 0.0   ;;  %s588_s0 = inlined_call_operand.vmem [shape: f32[200,2], index: 0, kind: input, shape index: {}]   ;;  %s589_s1 = inlined_call_operand.vmem [shape: f32[32,200], index: 1, kind: input, shape index: {}]   ;;  %s590_s2 = inlined_call_operand.vmem [shape: f32[32,1], index: 2, kind: input, shape index: {}]   ;;  %s591_s3 = inlined_call_operand.vmem [shape: f32[32,1], index: 3, kind: input, shape index: {}]   ;;  %s592_s4 = inlined_call_operand.vmem [shape: f32[32,1], index: 4, kind: input, shape index: {}]   ;;  %s593_s5 = inlined_call_operand.vmem [shape: f32[32,2], index: 5, kind: output, shape index: {}]  }
   0x1   :  { %291 = vmatprep.subr.bf16.mxu0 %v368_v0  ;;  %327 = vmatprep.subr.bf16.mxu1 %v368_v0  ;;  %v28_v1 = vld [vmem:[%s588_s0] sm:$0xff]  ;;  %v29_v2 = vld [vmem:[%s588_s0 + $0x8] sm:$0xff]  ;;  %v30_v3 = vld [vmem:[%s588_s0 + $0x10] sm:$0xff]  ;;  %vm175_vm1 = vcmask 15360  }
   0x2   :  { %v292_v4 = vpack.c.bf16 %v29_v2, %v28_v1  ;;  %v31_v5 = vld [vmem:[%s588_s0 + $0x18] sm:$0xff]  ;;  %356 = vset.pattern.permute.xlu0 %v369_v6  ;;  %357 = vset.pattern.permute.xlu1 %v369_v6  ;;  %v32_v8 = vld [vmem:[%s588_s0 + $0x20] sm:$0xff]  ;;  %v33_v9 = vld [vmem:[%s588_s0 + $0x28] sm:$0xff] }
   0x3   :  { %v295_v7 = vpack.c.bf16 %v31_v5, %v30_v3  ;;  %v298_v10 = vpack.c.bf16 %v33_v9, %v32_v8  ;;  %v34_v11 = vld [vmem:[%s588_s0 + $0x30] sm:$0xff]  ;;  %v35_v12 = vld [vmem:[%s588_s0 + $0x38] sm:$0xff]  ;;  %v21_v13 = vld [vmem:[%s589_s1 + $0x8] sm:$0xff] }
   0x4   :  { %293 = vmatpush1.bf16.msra.mxu0 %v292_v4  ;;  %340 = vmatpush1.bf16.msra.mxu1 %v292_v4  ;;  %v25_v14 = vld [vmem:[%s589_s1 + $0x28] sm:$0xff]  ;;  %v301_v15 = vpack.c.bf16 %v35_v12, %v34_v11  ;;  %v53_v16 = vld [vmem:[%s590_s2] sm:$0xff]  ;;  %v55_v17 = vld [vmem:[%s590_s2 + $0x10] sm:$0xff] }
   0x5   :  { %294 = vmatprep.subr.bf16.mxu0 %v368_v0  ;;  %328 = vmatprep.subr.bf16.mxu1 %v368_v0  ;;  %v36_v18 = vld [vmem:[%s588_s0 + $0x40] sm:$0xff]  ;;  %v37_v19 = vld [vmem:[%s588_s0 + $0x48] sm:$0xff]  ;;  %v56_v21 = vld [vmem:[%s590_s2 + $0x18] sm:$0xff] }
   0x6   :  { %287 = vmatprep.mubr.msk.f32.mxu0 %vm77_vm0, %v21_v13  ;;  %289 = vmatprep.mubr.msk.f32.mxu1 %vm77_vm0, %v25_v14  ;;  %v54_v20 = vld [vmem:[%s590_s2 + $0x8] sm:$0xff]  ;;  %v304_v22 = vpack.c.bf16 %v37_v19, %v36_v18  ;;  %v38_v23 = vld [vmem:[%s588_s0 + $0x50] sm:$0xff]  ;;  %v39_v24 = vld [vmem:[%s588_s0 + $0x58] sm:$0xff] }
   0x7   :  { %59 = vperm.xlu0 %356, %v53_v16   ;;  %69 = vperm.xlu1 %357, %v55_v17   ;;  %v219_v25 = vld [vmem:[%s591_s3] sm:$0xff]  ;;  %v220_v26 = vld [vmem:[%s591_s3 + $0x8] sm:$0xff]  ;;  %v307_v27 = vpack.c.bf16 %v39_v24, %v38_v23  ;;  %v221_v30 = vld [vmem:[%s591_s3 + $0x10] sm:$0xff] }
   0x8   :  { %296 = vmatpush1.bf16.msra.mxu0 %v295_v7  ;;  %341 = vmatpush1.bf16.msra.mxu1 %v295_v7  ;;  %v40_v28 = vld [vmem:[%s588_s0 + $0x60] sm:$0xff]  ;;  %v41_v29 = vld [vmem:[%s588_s0 + $0x68] sm:$0xff]  ;;  %v222_v31 = vld [vmem:[%s591_s3 + $0x18] sm:$0xff] }
   0x9   :  { %297 = vmatprep.subr.bf16.mxu0 %v368_v0  ;;  %329 = vmatprep.subr.bf16.mxu1 %v368_v0  ;;  %v310_v32 = vpack.c.bf16 %v41_v29, %v40_v28  ;;  %v42_v33 = vld [vmem:[%s588_s0 + $0x70] sm:$0xff]  ;;  %v43_v34 = vld [vmem:[%s588_s0 + $0x78] sm:$0xff]  ;;  %v247_v35 = vld [vmem:[%s592_s4] sm:$0xff] }
   0xa   :  { %v248_v36 = vld [vmem:[%s592_s4 + $0x8] sm:$0xff]  ;;  %v313_v37 = vpack.c.bf16 %v43_v34, %v42_v33  ;;  %v44_v38 = vld [vmem:[%s588_s0 + $0x80] sm:$0xff]  ;;  %v249_v40 = vld [vmem:[%s592_s4 + $0x10] sm:$0xff] }
   0xb   :  { %64 = vperm.xlu0 %356, %v54_v20   ;;  %74 = vperm.xlu1 %357, %v56_v21   ;;  %v45_v39 = vld [vmem:[%s588_s0 + $0x88] sm:$0xff]  ;;  %v250_v41 = vld [vmem:[%s592_s4 + $0x18] sm:$0xff]  ;;  %v46_v43 = vld [vmem:[%s588_s0 + $0x90] sm:$0xff] }
   0xc   :  { %299 = vmatpush1.bf16.msra.mxu0 %v298_v10  ;;  %342 = vmatpush1.bf16.msra.mxu1 %v298_v10  ;;  %v316_v42 = vpack.c.bf16 %v45_v39, %v44_v38  ;;  %v47_v44 = vld [vmem:[%s588_s0 + $0x98] sm:$0xff]  ;;  %v48_v46 = vld [vmem:[%s588_s0 + $0xa0] sm:$0xff]  ;;  %v49_v47 = vld [vmem:[%s588_s0 + $0xa8] sm:$0xff] }
   0xd   :  { %300 = vmatprep.subr.bf16.mxu0 %v368_v0  ;;  %330 = vmatprep.subr.bf16.mxu1 %v368_v0  ;;  %v319_v45 = vpack.c.bf16 %v47_v44, %v46_v43  ;;  %v322_v48 = vpack.c.bf16 %v49_v47, %v48_v46  ;;  %v50_v49 = vld [vmem:[%s588_s0 + $0xb0] sm:$0xff]  ;;  %v51_v50 = vld [vmem:[%s588_s0 + $0xb8] sm:$0xff]  ;;  %v52_v53 = vld [vmem:[%s588_s0 + $0xc0] sm:$0xff] }
   0xe   :  { %v325_v51 = vpack.c.bf16 %v51_v50, %v50_v49  ;;  %v20_v54 = vld [vmem:[%s589_s1] sm:$0xff]  ;;  %v23_v56 = vld [vmem:[%s589_s1 + $0x18] sm:$0xff]  ;;  %v22_v58 = vld [vmem:[%s589_s1 + $0x10] sm:$0xff] }
   0xf   :  { %225 = vperm.xlu0 %356, %v219_v25   ;;  %230 = vperm.xlu1 %357, %v220_v26   ;;  %v24_v55 = vld [vmem:[%s589_s1 + $0x20] sm:$0xff]  ;;  %v27_v57 = vld [vmem:[%s589_s1 + $0x38] sm:$0xff]  ;;  %v26_v59 = vld [vmem:[%s589_s1 + $0x30] sm:$0xff] }
  0x10   :  { %302 = vmatpush1.bf16.msra.mxu0 %v301_v15  ;;  %343 = vmatpush1.bf16.msra.mxu1 %v301_v15 }
  0x11   :  { %303 = vmatprep.subr.bf16.mxu0 %v368_v0  ;;  %331 = vmatprep.subr.bf16.mxu1 %v368_v0 }
  0x13   :  { %235 = vperm.xlu0 %356, %v221_v30   ;;  %240 = vperm.xlu1 %357, %v222_v31  }
  0x14   :  { %305 = vmatpush1.bf16.msra.mxu0 %v304_v22  ;;  %344 = vmatpush1.bf16.msra.mxu1 %v304_v22 }
  0x15   :  { %306 = vmatprep.subr.bf16.mxu0 %v368_v0  ;;  %332 = vmatprep.subr.bf16.mxu1 %v368_v0 }
  0x17   :  { %253 = vperm.xlu0 %356, %v247_v35   ;;  %258 = vperm.xlu1 %357, %v248_v36  }
  0x18   :  { %308 = vmatpush1.bf16.msra.mxu0 %v307_v27  ;;  %345 = vmatpush1.bf16.msra.mxu1 %v307_v27 }
  0x19   :  { %309 = vmatprep.subr.bf16.mxu0 %v368_v0  ;;  %333 = vmatprep.subr.bf16.mxu1 %v368_v0 }
  0x1b   :  { %263 = vperm.xlu0 %356, %v249_v40   ;;  %268 = vperm.xlu1 %357, %v250_v41  }
  0x1c   :  { %311 = vmatpush1.bf16.msra.mxu0 %v310_v32  ;;  %346 = vmatpush1.bf16.msra.mxu1 %v310_v32 }
  0x1d   :  { %312 = vmatprep.subr.bf16.mxu0 %v368_v0  ;;  %334 = vmatprep.subr.bf16.mxu1 %v368_v0 }
  0x20   :  { %314 = vmatpush1.bf16.msra.mxu0 %v313_v37  ;;  %347 = vmatpush1.bf16.msra.mxu1 %v313_v37 }
  0x21   :  { %315 = vmatprep.subr.bf16.mxu0 %v368_v0  ;;  %335 = vmatprep.subr.bf16.mxu1 %v368_v0 }
  0x24   :  { %317 = vmatpush1.bf16.msra.mxu0 %v316_v42  ;;  %348 = vmatpush1.bf16.msra.mxu1 %v316_v42 }
  0x25   :  { %318 = vmatprep.subr.bf16.mxu0 %v368_v0  ;;  %336 = vmatprep.subr.bf16.mxu1 %v368_v0 }
  0x28   :  { %320 = vmatpush1.bf16.msra.mxu0 %v319_v45  ;;  %349 = vmatpush1.bf16.msra.mxu1 %v319_v45 }
  0x29   :  { %321 = vmatprep.subr.bf16.mxu0 %v368_v0  ;;  %337 = vmatprep.subr.bf16.mxu1 %v368_v0 }
  0x2c   :  { %323 = vmatpush1.bf16.msra.mxu0 %v322_v48  ;;  %350 = vmatpush1.bf16.msra.mxu1 %v322_v48 }
  0x2d   :  { %324 = vmatprep.subr.bf16.mxu0 %v368_v0  ;;  %338 = vmatprep.subr.bf16.mxu1 %v368_v0 }
  0x30   :  { %326 = vmatpush1.bf16.msra.mxu0 %v325_v51  ;;  %351 = vmatpush1.bf16.msra.mxu1 %v325_v51 }
  0x31   :  { %138 = vmatprep.subr.mxu0 %v370_v52  ;;  %339 = vmatprep.subr.mxu1 %v370_v52 }
  0x34   :  { %139 = vmatpush1.msra.mxu0 %v52_v53  ;;  %352 = vmatpush1.msra.mxu1 %v52_v53 }
  0x35   :  { %155 = vmatmul.mubr.f32.vlgmr.msra.gmra.mrb[0].mxu0 %v20_v54  ;;  %165 = vmatmul.mubr.f32.vlgmr.msra.gmra.mrb[0].mxu1 %v24_v55 }
  0x36   :  { %288 = vmatprep.mubr.msk.f32.mxu0 %vm77_vm0, %v23_v56  ;;  %290 = vmatprep.mubr.msk.f32.mxu1 %vm77_vm0, %v27_v57 }
  0x39   :  { %160 = vmatmul.mubr.f32.gmra.mrb[2].mxu0 %v22_v58  ;;  %170 = vmatmul.mubr.f32.gmra.mrb[2].mxu1 %v26_v59 }
  0x86   :  { %v60_v60 = vpop.permute.xlu0 %59  ;;  %v70_v61 = vpop.permute.xlu1 %69 }
  0x8a   :  { %v65_v2 = vpop.permute.xlu0 %64  ;;  %v75_v10 = vpop.permute.xlu1 %74 }
  0x8e   :  { %v226_v47 = vpop.permute.xlu0 %225  ;;  %v231_v49 = vpop.permute.xlu1 %230 }
  0x92   :  { %v236_v51 = vpop.permute.xlu0 %235  ;;  %v241_v52 = vpop.permute.xlu1 %240 }
  0x96   :  { %v254_v53 = vpop.permute.xlu0 %253  ;;  %v259_v54 = vpop.permute.xlu1 %258 }
 0x108   :  { %v156_v62 = vpop.f32.mrb[0].mxu0  ;;  %v166_v63 = vpop.f32.mrb[0].mxu1 }
 0x109   :  { %v158_v0 = vpop.f32.mrb[1].mxu0  ;;  %v168_v1 = vpop.f32.mrb[1].mxu1  ;;  %v157_v3 = vadd.f32 %v156_v62, %v60_v60  ;;  %v167_v6 = vadd.f32 %v166_v63, %v70_v61 }
 0x10a   :  { %v264_v0 = vpop.permute.xlu0 %263  ;;  %v269_v1 = vpop.permute.xlu1 %268 }
 0x10b   :  { %v176_v11 = vsel %vm175_vm1, %v157_v3, 0.0  ;;  %v179_v15 = vsel %vm175_vm1, %v167_v6, 0.0 }
 0x10c   :  { %v161_v4 = vpop.f32.mrb[2].mxu0  ;;  %v171_v5 = vpop.f32.mrb[2].mxu1 }
 0x10d   :  { %v162_v7 = vadd.f32 %v161_v4, %v65_v2  ;;  %v163_v8 = vpop.f32.mrb[3].mxu0  ;;  %v173_v9 = vpop.f32.mrb[3].mxu1  ;;  %v172_v13 = vadd.f32 %v171_v5, %v75_v10 }
 0x10f   :  { %v177_v12 = vsel %vm175_vm1, %v162_v7, 0.0  ;;  %v181_v17 = vsel %vm175_vm1, %v172_v13, 0.0 }
 0x110   :  { %v178_v14 = vadd.f32 %v177_v12, %v176_v11 }
 0x112   :  { %v180_v16 = vadd.f32 %v179_v15, %v178_v14 }
 0x114   :  { %v182_v18 = vadd.f32 %v181_v17, %v180_v16 }
 0x116   :  { %v183_v19 = vrot.slane %v182_v18, 4 }
 0x118   :  { %v184_v20 = vadd.f32 %v183_v19, %v182_v18 }
 0x11a   :  { %v185_v21 = vrot.slane %v184_v20, 2 }
 0x11c   :  { %v186_v22 = vadd.f32 %v185_v21, %v184_v20 }
 0x11e   :  { %v187_v23 = vrot.slane %v186_v22, 1 }
 0x120   :  { %v188_v24 = vadd.f32 %v187_v23, %v186_v22 }
 0x122   :  { %v190_v25 = vmul.f32 0.03125, %v188_v24 }
 0x124   :  { %v191_v26 = vsub.f32 %v157_v3, %v190_v25  ;;  %v192_v27 = vsub.f32 %v162_v7, %v190_v25  ;;  %v193_v28 = vsub.f32 %v167_v6, %v190_v25  ;;  %v194_v29 = vsub.f32 %v172_v13, %v190_v25 }
 0x126   :  { %v195_v30 = vmul.f32 %v191_v26, %v191_v26  ;;  %v196_v31 = vmul.f32 %v192_v27, %v192_v27  ;;  %v197_v32 = vmul.f32 %v193_v28, %v193_v28  ;;  %v198_v33 = vmul.f32 %v194_v29, %v194_v29 }
 0x128   :  { %v199_v34 = vsel %vm175_vm1, %v195_v30, 0.0  ;;  %v200_v35 = vsel %vm175_vm1, %v196_v31, 0.0  ;;  %v202_v37 = vsel %vm175_vm1, %v197_v32, 0.0  ;;  %v204_v39 = vsel %vm175_vm1, %v198_v33, 0.0 }
 0x129   :  { %v201_v36 = vadd.f32 %v200_v35, %v199_v34 }
 0x12b   :  { %v203_v38 = vadd.f32 %v202_v37, %v201_v36 }
 0x12d   :  { %v205_v40 = vadd.f32 %v204_v39, %v203_v38 }
 0x12f   :  { %v206_v41 = vrot.slane %v205_v40, 4 }
 0x131   :  { %v207_v42 = vadd.f32 %v206_v41, %v205_v40 }
 0x133   :  { %v208_v43 = vrot.slane %v207_v42, 2 }
 0x135   :  { %v209_v44 = vadd.f32 %v208_v43, %v207_v42 }
 0x137   :  { %v210_v45 = vrot.slane %v209_v44, 1 }
 0x139   :  { %v211_v46 = vadd.f32 %v210_v45, %v209_v44 }
 0x13b   :  { %v212_v48 = vmul.f32 0.03125, %v211_v46 }
 0x13d   :  { %v213_v50 = vadd.f32 1e-05, %v212_v48 }
 0x13f   :  { %358 = vrsqrt.f32 %v213_v50 }
 0x149   :  { %v359_v55 = vpop.eup %358 }
 0x14a   :  { %v215_v56 = vmul.f32 %v359_v55, %v191_v26  ;;  %v216_v57 = vmul.f32 %v359_v55, %v192_v27  ;;  %v217_v58 = vmul.f32 %v359_v55, %v193_v28  ;;  %v218_v59 = vmul.f32 %v359_v55, %v194_v29 }
 0x14c   :  { %v243_v60 = vmul.f32 %v226_v47, %v215_v56  ;;  %v244_v61 = vmul.f32 %v231_v49, %v216_v57  ;;  %v245_v62 = vmul.f32 %v236_v51, %v217_v58  ;;  %v246_v63 = vmul.f32 %v241_v52, %v218_v59 }
 0x14e   :  { %v271_v2 = vadd.f32 %v254_v53, %v243_v60  ;;  %v272_v3 = vadd.f32 %v259_v54, %v244_v61  ;;  %v273_v4 = vadd.f32 %v264_v0, %v245_v62  ;;  %v274_v5 = vadd.f32 %v269_v1, %v246_v63 }
 0x150   :  { %360 = vtanh.f32 %v271_v2 }
 0x151   :  { %362 = vtanh.f32 %v272_v3 }
 0x152   :  { %364 = vtanh.f32 %v273_v4 }
 0x153   :  { %366 = vtanh.f32 %v274_v5 }
 0x15a   :  { %v361_v6 = vpop.eup %360 }
 0x15b   :  { %v363_v7 = vpop.eup %362  ;;  %279 = vst.msk [vmem:[%s593_s5] sm:$0xff] %vm175_vm1, %v361_v6 }
 0x15c   :  { %v365_v8 = vpop.eup %364  ;;  %280 = vst.msk [vmem:[%s593_s5 + $0x8] sm:$0xff] %vm175_vm1, %v363_v7 }
 0x15d   :  { %v367_v9 = vpop.eup %366  ;;  %281 = vst.msk [vmem:[%s593_s5 + $0x10] sm:$0xff] %vm175_vm1, %v365_v8 }
 0x15e   :  { %282 = vst.msk [vmem:[%s593_s5 + $0x18] sm:$0xff] %vm175_vm1, %v367_v9 }

// kernel: critic_forward.7
= control target key start
LH: loop header
LB: loop body
LE: loop exit
PB: predicated region body
PF: predicated region fallthrough
CT: control target
= control target key end

     0   :  { %s999_s24 = smov 0   ;;  %s1067_s0 = inlined_call_operand.vmem [shape: f32[36,2], index: 0, kind: input, shape index: {}]   ;;  %s1068_s1 = inlined_call_operand.vmem [shape: f32[2,32,36], index: 1, kind: input, shape index: {}]   ;;  %s1069_s2 = inlined_call_operand.vmem [shape: f32[2,32,1], index: 2, kind: input, shape index: {}]   ;;  %s1070_s3 = inlined_call_operand.vmem [shape: f32[2,32,32], index: 3, kind: input, shape index: {}]   ;;  %s1071_s4 = inlined_call_operand.vmem [shape: f32[2,32,1], index: 4, kind: input, shape index: {}]   ;;  %s1072_s5 = inlined_call_operand.vmem [shape: f32[2,1,32], index: 5, kind: input, shape index: {}]   ;;  %s1073_s6 = inlined_call_operand.vmem [shape: f32[2,1,1], index: 6, kind: input, shape index: {}]   ;;  %s1074_s7 = inlined_call_operand.vmem [shape: f32[2,1,2], index: 7, kind: output, shape index: {}]  }
   0x1 LB: > { %s819_s25 = sadd.s32 4294967295, %s953_s24   ;;  %p823_p0 = scmp.ge.s32.totalorder %s953_s24, 1  ;;  %s953_s24 = sphi %s999_s24, %s17_s24  }
   0x2   : > { %p283_p1 = scmp.lt.s32.totalorder %s953_s24, 3 }
   0x4   : > { %p284_p2 = pnand %p823_p0, %p283_p1 }
   0x5   : > { %v363_v0 = vld [vmem:[%s1067_s0] sm:$0xff] (!%p284_p2)  ;;  %v364_v1 = vld [vmem:[%s1067_s0 + $0x8] sm:$0xff] (!%p284_p2)  ;;  %v365_v2 = vld [vmem:[%s1067_s0 + $0x10] sm:$0xff] (!%p284_p2)  ;;  %p334_p3 = scmp.lt.s32.totalorder (!%p284_p2), %s819_s25, 1  ;;  %v955_v6 = vmov (!%p284_p2), 0   ;;  %vm396_vm0 = vcmask (!%p284_p2), 293888  }
   0x6   : > { %287 = sbr.rel (%p284_p2) target bundleno = 687 (0x2af), region = 48  ;;  %v911_v3 = vpack.c.bf16 (!%p284_p2), %v364_v1, %v363_v0  ;;  %v366_v4 = vld [vmem:[%s1067_s0 + $0x18] sm:$0xff] (!%p284_p2)  ;;  %945 = vset.pattern.permute.xlu0 (!%p284_p2), %v955_v6  ;;  %946 = vset.pattern.permute.xlu1 (!%p284_p2), %v955_v6  ;;  %v367_v7 = vld [vmem:[%s1067_s0 + $0x20] sm:$0xf] (!%p284_p2)  ;;  %vm409_vm1 = vcmask (!%p284_p2), 1043456   ;;  %vm530_vm2 = vcmask (!%p284_p2), 261120   ;;  %v639_v0 = vlaneseq (!%p284_p2) }
   0x7   : > { %v915_v5 = vpack.c.bf16 (!%p284_p2), %v366_v4, %v365_v2  ;;  %v956_v43 = vmov (!%p284_p2), 0.0|0.0   ;;  %vm957_vm3 = vmmov (!%p284_p2), 0   ;;  %v958_v44 = vmov (!%p284_p2), 0.0  }
   0x8   : > { %912 = vmatprep.subr.bf16.mxu0 (!%p284_p2), %v911_v3  ;;  %v640_v1 = vshrl.u32 (!%p284_p2), %v639_v0, 7  ;;  %vm716_vm4 = vcmask (!%p284_p2), 8192  }
   0x9   : > { %914 = vmatpush3.bf16.msra.mxu0 (!%p284_p2), %v911_v3 }
   0xa   : > { %916 = vmatprep.subr.bf16.mxu0 (!%p284_p2), %v915_v5  ;;  %v641_v2 = vsub.s32 (!%p284_p2), 0, %v640_v1 }
   0xd   : > { %s1076_s25 = smov (!%p334_p3, %s819_s25), 1  ;;  %918 = vmatpush3.bf16.msra.mxu0 %v915_v5 }
   0xe   : > { %s1022_s11 = sshll.u32 %s1076_s25, 5  ;;  %878 = vmatprep.subr.msk.mxu0 %vm409_vm1, %v367_v7  ;;  %s359_s27 = scalar_lea.vmem %s1073_s6, %s1076_s25 }
   0xf   : > { %s338_s14 = scalar_lea.vmem %s1068_s1, %s1022_s11  ;;  %s343_s17 = scalar_lea.vmem %s1069_s2, %s1022_s11  ;;  %v633_v20 = vld [vmem:[%s359_s27] sm:$0x1] }
  0x10   : > { %v368_v8 = vld [vmem:[%s338_s14] sm:$0xff]  ;;  %v374_v10 = vld [vmem:[%s343_s17 + $0x10] sm:$0xff]  ;;  %v373_v11 = vld [vmem:[%s343_s17 + $0x8] sm:$0xff]  ;;  %s353_s22 = scalar_lea.vmem %s1071_s4, %s1022_s11  ;;  %s348_s30 = scalar_lea.vmem %s1070_s3, %s1022_s11 }
  0x11   : > { %880 = vmatprep.mubr.msk.f32.mxu0 %vm396_vm0, %v368_v8  ;;  %v372_v9 = vld [vmem:[%s343_s17] sm:$0xff]  ;;  %388 = vperm.xlu1 %946, %v374_v10   ;;  %v369_v12 = vld [vmem:[%s338_s14 + $0x8] sm:$0xff]  ;;  %v375_v13 = vld [vmem:[%s343_s17 + $0x18] sm:$0xff]  ;;  %s356_s10 = scalar_lea.vmem %s1072_s5, %s1076_s25  ;;  %s362_s13 = scalar_lea.vmem %s1074_s7, %s1076_s25 }
  0x12   : > { %378 = vperm.xlu0 %945, %v372_v9   ;;  %v370_v14 = vld [vmem:[%s338_s14 + $0x10] sm:$0xff]  ;;  %879 = vmatpush3.msk.msra.mxu0 %vm409_vm1, %v367_v7  ;;  %v506_v15 = vld [vmem:[%s353_s22] sm:$0xff]  ;;  %v371_v16 = vld [vmem:[%s338_s14 + $0x18] sm:$0xff] }
  0x13   : > { %881 = vmatmul.mubr.msk.f32.vlgmr.msra.gmra.mrb[0].mxu0 %vm396_vm0, %v369_v12  ;;  %v507_v17 = vld [vmem:[%s353_s22 + $0x8] sm:$0xff]  ;;  %v508_v18 = vld [vmem:[%s353_s22 + $0x10] sm:$0xff]  ;;  %v509_v19 = vld [vmem:[%s353_s22 + $0x18] sm:$0xff] }
  0x14   : > { %883 = vmatprep.mubr.msk.f32.mxu0 %vm396_vm0, %v370_v14  ;;  %v502_v21 = vld [vmem:[%s348_s30] sm:$0xff]  ;;  %v503_v40 = vld [vmem:[%s348_s30 + $0x8] sm:$0xff]  ;;  %v504_v41 = vld [vmem:[%s348_s30 + $0x10] sm:$0xff] }
  0x15   : > { %393 = vperm.xlu1 %946, %v375_v13   ;;  %894 = vmatprep.mubr.msk.f32.mxu1 %vm530_vm2, %v502_v21  ;;  %v505_v42 = vld [vmem:[%s348_s30 + $0x18] sm:$0xff]  ;;  %v632_v63 = vld [vmem:[%s356_s10] sm:$0x1] }
  0x16   : > { %383 = vperm.xlu0 %945, %v373_v11  }
  0x17   : > { %884 = vmatmul.mubr.msk.f32.gmra.mrb[2].mxu0 %vm396_vm0, %v371_v16 }
  0x19   : > { %517 = vperm.xlu1 %946, %v507_v17  }
  0x1a   : > { %512 = vperm.xlu0 %945, %v506_v15  }
  0x1d   : > { %527 = vperm.xlu1 %946, %v509_v19  }
  0x1e   : > { %522 = vperm.xlu0 %945, %v508_v18  }
  0x22   : > { %636 = vperm.xlu0 %945, %v633_v20  }
  0x90   : > { %v389_v23 = vpop.permute.xlu1 %388 }
  0x91   : > { %v379_v22 = vpop.permute.xlu0 %378 }
  0x94   : > { %v394_v30 = vpop.permute.xlu1 %393 }
  0x95   : > { %v384_v24 = vpop.permute.xlu0 %383 }
  0x98   : > { %v518_v45 = vpop.permute.xlu1 %517 }
  0x99   : > { %v513_v46 = vpop.permute.xlu0 %512 }
  0x9c   : > { %v528_v52 = vpop.permute.xlu1 %527 }
  0x9d   : > { %v523_v55 = vpop.permute.xlu0 %522 }
  0xa1   : > { %v637_v3 = vpop.permute.xlu0 %636 }
  0xa2   : > { %v642_v4 = vrot.slane %v637_v3, %v641_v2 }
  0xe6   : > { %v882_v25 = vpop.f32.mrb[0].mxu0 }
  0xe7   : > { %v485_v26 = vadd.f32 %v882_v25, %v384_v24  ;;  %v479_v27 = vpop.f32.mrb[1].mxu0 }
  0xe8   : > { %v480_v28 = vadd.f32 %v479_v27, %v379_v22 }
  0xe9   : > { %v499_v29 = vmax.f32 %v485_v26, 0.0 }
  0xea   : > { %v498_v31 = vmax.f32 %v480_v28, 0.0  ;;  %v885_v32 = vpop.f32.mrb[2].mxu0 }
  0xeb   : > { %v495_v33 = vadd.f32 %v885_v32, %v394_v30  ;;  %v489_v34 = vpop.f32.mrb[3].mxu0 }
  0xec   : > { %v490_v35 = vadd.f32 %v489_v34, %v389_v23  ;;  %v919_v36 = vpack.c.bf16 %v499_v29, %v498_v31 }
  0xed   : > { %v501_v37 = vmax.f32 %v495_v33, 0.0 }
  0xee   : > { %v500_v38 = vmax.f32 %v490_v35, 0.0  ;;  %920 = vmatprep.subr.bf16.mxu1 %v919_v36 }
  0xef   : > { %922 = vmatpush3.bf16.msra.mxu1 %v919_v36 }
  0xf0   : > { %v923_v39 = vpack.c.bf16 %v501_v37, %v500_v38 }
  0xf2   : > { %924 = vmatprep.subr.bf16.mxu1 %v923_v39 }
  0xf3   : > { %926 = vmatpush3.bf16.msra.mxu1 %v923_v39 }
  0xf4   : > { %927 = vmatprep.subr.bf16.mxu1 %v956_v43 }
  0xf6   : > { %895 = vmatmul.mubr.msk.f32.vlgmr.msra.gmra.mrb[0].mxu1 %vm530_vm2, %v503_v40 }
  0xf7   : > { %897 = vmatprep.mubr.msk.f32.mxu1 %vm530_vm2, %v504_v41 }
  0xfa   : > { %898 = vmatmul.mubr.msk.f32.gmra.mrb[2].mxu1 %vm530_vm2, %v505_v42 }
  0xfb   : > { %908 = vmatprep.mubr.msk.f32.mxu1 %vm957_vm3, %v958_v44 }
 0x1c9   : > { %v896_v47 = vpop.f32.mrb[0].mxu1 }
 0x1ca   : > { %v615_v48 = vadd.f32 %v896_v47, %v518_v45  ;;  %v609_v49 = vpop.f32.mrb[1].mxu1 }
 0x1cb   : > { %v610_v50 = vadd.f32 %v609_v49, %v513_v46 }
 0x1cc   : > { %v629_v51 = vmax.f32 %v615_v48, 0.0 }
 0x1cd   : > { %v628_v53 = vmax.f32 %v610_v50, 0.0  ;;  %v899_v54 = vpop.f32.mrb[2].mxu1 }
 0x1ce   : > { %v625_v56 = vadd.f32 %v899_v54, %v528_v52  ;;  %v619_v57 = vpop.f32.mrb[3].mxu1 }
 0x1cf   : > { %v928_v58 = vpack.c.bf16 %v629_v51, %v628_v53  ;;  %v620_v59 = vadd.f32 %v619_v57, %v523_v55 }
 0x1d0   : > { %v631_v60 = vmax.f32 %v625_v56, 0.0 }
 0x1d1   : > { %v630_v61 = vmax.f32 %v620_v59, 0.0  ;;  %929 = vmatpush3.bf16.msra.mxu1 %v928_v58 }
 0x1d2   : > { %930 = vmatprep.subr.bf16.mxu1 %v956_v43 }
 0x1d3   : > { %v931_v62 = vpack.c.bf16 %v631_v60, %v630_v61 }
 0x1d5   : > { %932 = vmatpush3.bf16.msra.mxu1 %v931_v62 }
 0x1d8   : > { %909 = vmatmul.mubr.msk.f32.vlgmr.msra.gmra.mrb[4].mxu1 %vm530_vm2, %v632_v63 }
 0x2ab   : > { %v712_v5 = vpop.f32.mrb[4].mxu1 }
 0x2ac   : > { %v713_v6 = vadd.f32 %v712_v5, %v642_v4  ;;  %v910_v7 = vpop.f32.mrb[5].mxu1 }
 0x2ae   : > { %717 = vst.msk [vmem:[%s362_s13] sm:$0x1] %vm716_vm4, %v713_v6 }
 0x2af PF: > { %s17_s24 = sadd.s32 1, %s953_s24  }
 0x2b0   : > { %p14_p4 = scmp.ge.s32.totalorder %s17_s24, 4  }
 0x2b2   :  { %16 = sbr.rel (!%p14_p4) target bundleno = 1 (0x1), region = 93 }

</bundles_post_ra>
